<compile_context>
chip_gen: v7x
topology: tpu7x:2x2x1
jax: 0.10.0
libtpu: 0.0.40
codegen_flags: <defaults>
</compile_context>

<pallas_src>
import jax
import jax.numpy as jnp
from jax.experimental import pallas as pl
from jax.experimental.pallas import tpu as pltpu


def _round_up(x, m):
    return ((x + m - 1) // m) * m


def _rope_kernel(pos_ref, inv_ref, cos_ref, sin_ref):
    # pos_ref: (TS/2, 2) f32 — lane 0: positions of tile rows [0, TS/2),
    #                           lane 1: positions of tile rows [TS/2, TS).
    # inv_ref: (1, dim) f32  — inv_freq duplicated: [inv_half | inv_half].
    # cos_ref / sin_ref: (TS, dim) output tiles in x.dtype.
    ts, dim = cos_ref.shape
    ts_half = ts // 2
    half = dim // 2

    p0 = pos_ref[:, 0:1]                    # (TS/2, 1)
    p1 = pos_ref[:, 1:2]                    # (TS/2, 1)
    inv = inv_ref[...]                      # (1, dim), both halves identical

    lane = jax.lax.broadcasted_iota(jnp.int32, (ts_half, dim), 1)
    in_lo = lane < half

    # Pack both row-groups' unique frequencies into ONE lane-dense block so the
    # transcendentals (EUP, the saturating unit) run once instead of twice.
    p_packed = jnp.where(in_lo, p0, p1)     # (TS/2, dim)  VPU lane broadcast
    freqs = p_packed * inv                  # (TS/2, dim)  VPU multiply (f32)
    cos_p = jnp.cos(freqs)                  # EUP — half the pushes
    sin_p = jnp.sin(freqs)

    # Replicate each 64-lane half into both output halves: one XLU roll + a
    # lane select per array (XLU slot is idle in this kernel), then full-width
    # lane-dense stores.
    cos_r = pltpu.roll(cos_p, shift=half, axis=1)
    sin_r = pltpu.roll(sin_p, shift=half, axis=1)

    cos_lo = jnp.where(in_lo, cos_p, cos_r)   # rows [0, TS/2):  [lo | lo]
    cos_hi = jnp.where(in_lo, cos_r, cos_p)   # rows [TS/2, TS): [hi | hi]
    sin_lo = jnp.where(in_lo, sin_p, sin_r)
    sin_hi = jnp.where(in_lo, sin_r, sin_p)

    cos_ref[0:ts_half, :] = cos_lo.astype(cos_ref.dtype)
    cos_ref[ts_half:, :] = cos_hi.astype(cos_ref.dtype)
    sin_ref[0:ts_half, :] = sin_lo.astype(sin_ref.dtype)
    sin_ref[ts_half:, :] = sin_hi.astype(sin_ref.dtype)


def qwen2_rotary_embedding(x, pos, inv_freq):
    """x: only dtype is used (like the torch module). pos: (B, S) any int/float.
    inv_freq: (dim//2,) f32."""
    B, S = pos.shape
    half = inv_freq.shape[0]
    dim = 2 * half
    out_dtype = x.dtype
    total = B * S

    # ---- tile-size selection ---------------------------------------------
    # Rows are padded to a multiple of 16 so the tile can always be split into
    # two sublane-aligned halves for the packed-EUP trick.
    padded_total = _round_up(total, 16)
    if padded_total <= 1024:
        TS = padded_total                   # one step: launch-overhead dominated
    else:
        # >= 2 steps so the "parallel" axis can shard across v7x's 2 TCs,
        # capped at 4096 rows/step: outputs 2 x 4096 x 128 x 2B x 2buf = 4 MiB
        # + ~2 MiB packed positions + f32 temporaries — well under the 32 MiB
        # limit set below on every generation.
        TS = min(4096, _round_up(pl.cdiv(padded_total, 2), 16))
    grid = (pl.cdiv(padded_total, TS),)
    ts_half = TS // 2
    n_rows = grid[0] * TS

    # ---- wrapper-side layout plumbing (O(B*S) elements, negligible) -------
    pos_flat = pos.reshape(total).astype(jnp.float32)
    pos_flat = jnp.pad(pos_flat, (0, n_rows - total))
    # Pair rows r and r + TS/2 of every tile side-by-side: feeds the kernel's
    # lane-packed cos/sin and halves the lane-padded positions VMEM buffer.
    pos_pairs = (
        pos_flat.reshape(grid[0], 2, ts_half)
        .transpose(0, 2, 1)
        .reshape(grid[0] * ts_half, 2)
    )
    # inv_freq duplicated to full lane width (matches torch concat([freqs, freqs])).
    inv_dup = jnp.concatenate([inv_freq, inv_freq], axis=0).reshape(1, dim).astype(jnp.float32)

    cos, sin = pl.pallas_call(
        _rope_kernel,
        out_shape=(
            jax.ShapeDtypeStruct((padded_total, dim), out_dtype),
            jax.ShapeDtypeStruct((padded_total, dim), out_dtype),
        ),
        grid=grid,
        in_specs=[
            pl.BlockSpec((ts_half, 2), lambda i: (i, 0)),   # packed positions tile
            pl.BlockSpec((1, dim), lambda i: (0, 0)),       # duplicated inv_freq (resident)
        ],
        out_specs=(
            pl.BlockSpec((TS, dim), lambda i: (i, 0)),
            pl.BlockSpec((TS, dim), lambda i: (i, 0)),
        ),
        compiler_params=pltpu.CompilerParams(
            dimension_semantics=("parallel",),
            vmem_limit_bytes=32 * 1024 * 1024,
        ),
    )(pos_pairs, inv_dup)

    if padded_total != total:
        # Rare path (B*S not a multiple of 16): drop the padded rows.
        cos = cos[:total]
        sin = sin[:total]
    return cos.reshape(B, S, dim), sin.reshape(B, S, dim)


if __name__ == "__main__":
    key = jax.random.PRNGKey(0)
    kx, kp, kp2 = jax.random.split(key, 3)

    # Config values from Qwen2VLConfig defaults
    hidden_size = 2048
    num_attention_heads = 16
    rope_theta = 1000000.0
    dim = hidden_size // num_attention_heads  # 128 (head_dim)

    # inv_freq buffer exactly as in __init__ (float32)
    inv_freq = 1.0 / (rope_theta ** (jnp.arange(0, dim, 2, dtype=jnp.float32) / dim))

    def reference(x, pos):
        freqs = pos[:, :, None].astype(jnp.float32) * inv_freq[None, None, :]
        emb = jnp.concatenate([freqs, freqs], axis=-1)
        return jnp.cos(emb).astype(x.dtype), jnp.sin(emb).astype(x.dtype)

    # --- Case 1: small shape matching the module's forward (B=2, S=8) ------
    B, S = 2, 8
    x = jax.random.normal(kx, (B, S, hidden_size), dtype=jnp.float32).astype(jnp.bfloat16)
    pos = jax.random.randint(kp, (B, S), 0, 4096).astype(jnp.int32)

    cos, sin = qwen2_rotary_embedding(x, pos, inv_freq)
    jax.block_until_ready((cos, sin))

    cos_ref, sin_ref = reference(x, pos)
    assert cos.shape == (B, S, dim) and cos.dtype == x.dtype
    assert sin.shape == (B, S, dim) and sin.dtype == x.dtype
    assert jnp.allclose(cos.astype(jnp.float32), cos_ref.astype(jnp.float32), atol=1e-2)
    assert jnp.allclose(sin.astype(jnp.float32), sin_ref.astype(jnp.float32), atol=1e-2)

    # --- Case 2: odd B*S (exercises the row-padding / slice-back path) -----
    B2, S2 = 1, 13
    x2 = jnp.zeros((B2, S2, hidden_size), dtype=jnp.bfloat16)
    pos2 = jax.random.randint(kp2, (B2, S2), 0, 4096).astype(jnp.int32)

    cos2, sin2 = qwen2_rotary_embedding(x2, pos2, inv_freq)
    jax.block_until_ready((cos2, sin2))

    cos2_ref, sin2_ref = reference(x2, pos2)
    assert cos2.shape == (B2, S2, dim) and cos2.dtype == x2.dtype
    assert jnp.allclose(cos2.astype(jnp.float32), cos2_ref.astype(jnp.float32), atol=1e-2)
    assert jnp.allclose(sin2.astype(jnp.float32), sin2_ref.astype(jnp.float32), atol=1e-2)

    print("KERNEL_OK")
</pallas_src>

<mosaic_0001>
module attributes {stable_mosaic.version = 11 : i64} {
  func.func @_rope_kernel(%arg0: i32, %arg1: memref<8x2xf32, #tpu.memory_space<vmem>>, %arg2: memref<1x128xf32, #tpu.memory_space<vmem>>, %arg3: memref<16x128xbf16, #tpu.memory_space<vmem>>, %arg4: memref<16x128xbf16, #tpu.memory_space<vmem>>) attributes {dimension_semantics = [#tpu.dimension_semantics<parallel>], iteration_bounds = array<i64: 1>, scalar_prefetch = 0 : i64, scratch_operands = 0 : i64, tpu.core_type = #tpu.core_type<tc>, window_params = [{transform_indices = @transform_0, window_bounds = array<i64: 8, 2>}, {pipeline_mode = #tpu.pipeline_mode<synchronous>, transform_indices = @transform_1, window_bounds = array<i64: 1, 128>}, {transform_indices = @transform_2, window_bounds = array<i64: 16, 128>}, {transform_indices = @transform_3, window_bounds = array<i64: 16, 128>}]} {
    %c0 = arith.constant 0 : index
    %c0_0 = arith.constant 0 : index
    %0 = vector.load %arg1[%c0, %c0_0] : memref<8x2xf32, #tpu.memory_space<vmem>>, vector<8x1xf32>
    %c0_1 = arith.constant 0 : index
    %c1 = arith.constant 1 : index
    %1 = vector.load %arg1[%c0_1, %c1] : memref<8x2xf32, #tpu.memory_space<vmem>>, vector<8x1xf32>
    %c0_2 = arith.constant 0 : index
    %c0_3 = arith.constant 0 : index
    %2 = vector.load %arg2[%c0_2, %c0_3] : memref<1x128xf32, #tpu.memory_space<vmem>>, vector<1x128xf32>
    %3 = tpu.iota {dimensions = array<i32: 1>} : vector<8x128xi32>
    %c64_i32 = arith.constant 64 : i32
    %4 = vector.broadcast %c64_i32 : i32 to vector<8x128xi32>
    %5 = arith.cmpi slt, %3, %4 : vector<8x128xi32>
    %6 = vector.shape_cast %0 : vector<8x1xf32> to vector<8x1xf32>
    %7 = vector.broadcast %6 : vector<8x1xf32> to vector<8x128xf32>
    %8 = vector.shape_cast %1 : vector<8x1xf32> to vector<8x1xf32>
    %9 = vector.broadcast %8 : vector<8x1xf32> to vector<8x128xf32>
    %10 = arith.select %5, %7, %9 : vector<8x128xi1>, vector<8x128xf32>
    %11 = vector.broadcast %2 : vector<1x128xf32> to vector<8x128xf32>
    %12 = arith.mulf %10, %11 : vector<8x128xf32>
    %13 = math.cos %12 : vector<8x128xf32>
    %14 = math.sin %12 : vector<8x128xf32>
    %c64_i32_4 = arith.constant 64 : i32
    %15 = tpu.dynamic_rotate %13 by %c64_i32_4 dim 1 : vector<8x128xf32>, i32 -> vector<8x128xf32>
    %c64_i32_5 = arith.constant 64 : i32
    %16 = tpu.dynamic_rotate %14 by %c64_i32_5 dim 1 : vector<8x128xf32>, i32 -> vector<8x128xf32>
    %17 = arith.select %5, %13, %15 : vector<8x128xi1>, vector<8x128xf32>
    %18 = arith.select %5, %15, %13 : vector<8x128xi1>, vector<8x128xf32>
    %19 = arith.select %5, %14, %16 : vector<8x128xi1>, vector<8x128xf32>
    %20 = arith.select %5, %16, %14 : vector<8x128xi1>, vector<8x128xf32>
    %21 = arith.truncf %17 : vector<8x128xf32> to vector<8x128xbf16>
    %c0_6 = arith.constant 0 : index
    %c0_7 = arith.constant 0 : index
    %22 = vector.load %arg3[%c0_6, %c0_7] : memref<16x128xbf16, #tpu.memory_space<vmem>>, vector<8x128xbf16>
    tpu.vector_store %arg3[%c0_6, %c0_7], %21 {strides = array<i32>} : memref<16x128xbf16, #tpu.memory_space<vmem>>, vector<8x128xbf16>,
    %23 = arith.truncf %18 : vector<8x128xf32> to vector<8x128xbf16>
    %c8 = arith.constant 8 : index
    %c0_8 = arith.constant 0 : index
    %24 = vector.load %arg3[%c8, %c0_8] : memref<16x128xbf16, #tpu.memory_space<vmem>>, vector<8x128xbf16>
    tpu.vector_store %arg3[%c8, %c0_8], %23 {strides = array<i32>} : memref<16x128xbf16, #tpu.memory_space<vmem>>, vector<8x128xbf16>,
    %25 = arith.truncf %19 : vector<8x128xf32> to vector<8x128xbf16>
    %c0_9 = arith.constant 0 : index
    %c0_10 = arith.constant 0 : index
    %26 = vector.load %arg4[%c0_9, %c0_10] : memref<16x128xbf16, #tpu.memory_space<vmem>>, vector<8x128xbf16>
    tpu.vector_store %arg4[%c0_9, %c0_10], %25 {strides = array<i32>} : memref<16x128xbf16, #tpu.memory_space<vmem>>, vector<8x128xbf16>,
    %27 = arith.truncf %20 : vector<8x128xf32> to vector<8x128xbf16>
    %c8_11 = arith.constant 8 : index
    %c0_12 = arith.constant 0 : index
    %28 = vector.load %arg4[%c8_11, %c0_12] : memref<16x128xbf16, #tpu.memory_space<vmem>>, vector<8x128xbf16>
    tpu.vector_store %arg4[%c8_11, %c0_12], %27 {strides = array<i32>} : memref<16x128xbf16, #tpu.memory_space<vmem>>, vector<8x128xbf16>,
    return
  }
  func.func @transform_0(%arg0: i32) -> (i32, i32) {
    %c0_i32 = arith.constant 0 : i32
    %c0_i32_0 = arith.constant 0 : i32
    return %arg0, %c0_i32 : i32, i32
  }
  func.func @transform_1(%arg0: i32) -> (i32, i32) {
    %c0_i32 = arith.constant 0 : i32
    %c0_i32_0 = arith.constant 0 : i32
    %c0_i32_1 = arith.constant 0 : i32
    return %c0_i32, %c0_i32_0 : i32, i32
  }
  func.func @transform_2(%arg0: i32) -> (i32, i32) {
    %c0_i32 = arith.constant 0 : i32
    %c0_i32_0 = arith.constant 0 : i32
    return %arg0, %c0_i32 : i32, i32
  }
  func.func @transform_3(%arg0: i32) -> (i32, i32) {
    %c0_i32 = arith.constant 0 : i32
    %c0_i32_0 = arith.constant 0 : i32
    return %arg0, %c0_i32 : i32, i32
  }
}

</mosaic_0001>

<bundles_post_ra>
// kernel: tpu_custom_call.1
= control target key start
LH: loop header
LB: loop body
LE: loop exit
PB: predicated region body
PF: predicated region fallthrough
CT: control target
= control target key end

     0   :  { %9 = vsyncpa [#allocation3], 0  ;;  %s494_s0 = inlined_call_operand.vmem [shape: f32[8,2], index: 0, kind: input, shape index: {}]   ;;  %s495_s1 = inlined_call_operand.vmem [shape: f32[1,128], index: 1, kind: input, shape index: {}]   ;;  %s496_s2 = inlined_call_operand.hbm [shape: bf16[16,128], index: 2, kind: output, shape index: {0}]   ;;  %s497_s3 = inlined_call_operand.hbm [shape: bf16[16,128], index: 3, kind: output, shape index: {1}]  }
   0x1   :  { %v15_v0 = vld [vmem:[%s494_s0] sm:$0xff] }
   0x2   :  { %10 = vsyncpa [#allocation5], 0  ;;  %v386_v1 = vmov 0   ;;  %v387_v2 = vmov 1   ;;  %v17_v3 = vlaneseq  ;;  %v292_v6 = vld [vmem:[%s495_s1] ss:$0 sm:$0xff] }
   0x3   :  { %327 = vset.pattern.permute.xlu0 %v386_v1  ;;  %v388_v20 = vmov 683565275   ;;  %v389_v22 = vmov 2475754826   ;;  %v390_v25 = vmov 2131351028  }
   0x4   :  { %22 = vperm.xlu0 %327, %v15_v0   ;;  %v421_v4 = vand.u32 127, %v17_v3  ;;  %v391_v28 = vmov 2102212464   ;;  %v392_v31 = vmov 920167782   ;;  %s394_s0 = smov 64  }
   0x5   :  { %v393_v34 = vmov 1326507024   ;;  %s395_s1 = smov [#allocation2]   ;;  %s396_s17 = smov [#allocation4]  }
   0x6   :  { %vm19_vm0 = vcmp.lt.s32.totalorder %v421_v4, 64  ;;  %s265_s16 = sshll.u32 %s395_s1, 4  ;;  %s277_s18 = sshll.u32 %s396_s17, 4  ;;  %s266_s16 = int_to_ptr.vmem [resolvable:$true] %s265_s16  ;;  %s459_s18 = int_to_ptr.vmem [resolvable:$true] %s277_s18 }
   0x7   :  { %s338_s19 = scalar_lea.vmem %s266_s16, 128  ;;  %p343_p1 = scmp.lt.s32.totalorder %s266_s16, %s266_s16 }
   0x8   :  { %328 = vset.pattern.permute.xlu0 %v387_v2  ;;  %p339_p0 = scmp.ne.s32.totalorder %s266_s16, %s338_s19  ;;  %p344_p2 = scmp.lt.s32.totalorder %s338_s19, %s338_s19 }
   0x9   :  { %26 = vperm.xlu0 %328, %v15_v0  }
   0xa   :  { %p345_p3 = por %p344_p2, %p343_p1 }
   0xc   :  { %p346_p4 = pnand %p345_p3, %p339_p0 }
  0x83   :  { %v23_v5 = vpop.permute.xlu0 %22 }
  0x88   :  { %v27_v7 = vpop.permute.xlu0 %26 }
  0x89   :  { %v29_v8 = vsel %vm19_vm0, %v23_v5, %v27_v7 }
  0x8a   :  { %v429_v9 = vmul.f32 %v292_v6, %v29_v8 }
  0x8c   :  { %v40_v10 = vand.u32 2139095040, %v429_v9  ;;  %v37_v14 = vand.u32 2147483647, %v429_v9  ;;  %vm39_vm8 = vcmp.lt.s32.totalorder %v429_v9, 0 }
  0x8e   :  { %v41_v11 = vshrl.u32 %v40_v10, 23  ;;  %v44_v17 = vand.u32 8388607, %v37_v14  ;;  %vm38_vm9 = vcmp.le.f32.partialorder %v37_v14, 0.7853982 }
  0x90   :  { %v293_v12 = vadd.s32 4294967169, %v41_v11  ;;  %v45_v36 = vor.u32 8388608, %v44_v17 }
  0x92   :  { %v47_v13 = vadd.s32 1, %v293_v12  ;;  %v85_v50 = vshll.u32 %v45_v36, 8 }
  0x94   :  { %vm48_vm1 = vcmp.gt.s32.totalorder %v47_v13, 0 }
  0x95   :  { %v49_v15 = vsel %vm48_vm1, %v47_v13, 0  ;;  %vm129_vm1 = vweird.f32 %v429_v9 }
  0x96   :  { %v51_v16 = vand.u32 31, %v49_v15  ;;  %v50_v19 = vshrl.u32 %v49_v15, 5 }
  0x98   :  { %v52_v18 = vsub.s32 32, %v51_v16  ;;  %v54_v21 = vshll.u32 %v388_v20, %v51_v16  ;;  %v57_v23 = vshll.u32 %v389_v22, %v51_v16  ;;  %v60_v27 = vshll.u32 %v390_v25, %v51_v16 }
  0x99   :  { %v63_v30 = vshll.u32 %v391_v28, %v51_v16  ;;  %v66_v33 = vshll.u32 %v392_v31, %v51_v16  ;;  %vm69_vm2 = vcmp.lt.s32.totalorder %v50_v19, 1  ;;  %vm72_vm3 = vcmp.lt.s32.totalorder %v50_v19, 4 }
  0x9a   :  { %v55_v24 = vshrl.u32 %v389_v22, %v52_v18  ;;  %v58_v26 = vshrl.u32 %v390_v25, %v52_v18  ;;  %v61_v29 = vshrl.u32 %v391_v28, %v52_v18  ;;  %v64_v32 = vshrl.u32 %v392_v31, %v52_v18 }
  0x9b   :  { %v67_v35 = vshrl.u32 %v393_v34, %v52_v18  ;;  %v53_v45 = vshrl.u32 %v388_v20, %v52_v18  ;;  %vm71_vm4 = vcmp.lt.s32.totalorder %v50_v19, 3  ;;  %vm70_vm5 = vcmp.lt.s32.totalorder %v50_v19, 2 }
  0x9c   :  { %v56_v37 = vor.u32 %v55_v24, %v54_v21  ;;  %v59_v38 = vor.u32 %v58_v26, %v57_v23  ;;  %v62_v39 = vor.u32 %v61_v29, %v60_v27  ;;  %v65_v40 = vor.u32 %v64_v32, %v63_v30 }
  0x9d   :  { %v68_v41 = vor.u32 %v67_v35, %v66_v33 }
  0x9e   :  { %v74_v42 = vsel %vm72_vm3, %v62_v39, 2102212464  ;;  %v77_v43 = vsel %vm69_vm2, %v56_v37, %v59_v38  ;;  %v81_v44 = vsel %vm69_vm2, %v59_v38, %v62_v39  ;;  %v78_v46 = vsel %vm72_vm3, %v65_v40, 920167782 }
  0x9f   :  { %v82_v47 = vsel %vm72_vm3, %v68_v41, 1326507024  ;;  %v79_v48 = vsel %vm71_vm4, %v62_v39, %v78_v46  ;;  %v73_v51 = vsel %vm69_vm2, %v53_v45, %v56_v37  ;;  %v75_v52 = vsel %vm71_vm4, %v59_v38, %v74_v42 }
  0xa0   :  { %v83_v49 = vsel %vm71_vm4, %v65_v40, %v82_v47  ;;  %v80_v53 = vsel %vm70_vm5, %v77_v43, %v79_v48  ;;  %v76_v59 = vsel %vm70_vm5, %v73_v51, %v75_v52 }
  0xa1   :  { %v84_v54 = vsel %vm70_vm5, %v81_v44, %v83_v49  ;;  %v438_v57 = vmul.u32.u64.low %v85_v50, %v80_v53  ;;  %v439_v58 = vmul.u32.u64.high %v85_v50, %v80_v53, %v438_v57  ;;  %v92_v61 = vmul.u32 %v85_v50, %v76_v59 }
  0xa2   :  { %v435_v55 = vmul.u32.u64.low %v85_v50, %v84_v54  ;;  %v436_v56 = vmul.u32.u64.high %v85_v50, %v84_v54, %v435_v55 }
  0xa3   :  { %v95_v60 = vadd.s32 1, %v439_v58 }
  0xa4   :  { %vm94_vm6 = vc.u32 %v436_v56, %v438_v57  ;;  %v93_v11 = vadd.s32 %v438_v57, %v436_v56 }
  0xa5   :  { %v96_v62 = vsel %vm94_vm6, %v95_v60, %v439_v58 }
  0xa6   :  { %v97_v63 = vadd.s32 %v96_v62, %v92_v61 }
  0xa8   :  { %v98_v0 = vadd.s32 536870912, %v97_v63 }
  0xaa   :  { %v99_v1 = vshrl.u32 %v98_v0, 30 }
  0xac   :  { %v100_v2 = vshll.u32 %v99_v1, 30  ;;  %v123_v24 = vsub.s32 4, %v99_v1 }
  0xae   :  { %v101_v3 = vsub.s32 %v97_v63, %v100_v2  ;;  %v124_v27 = vsel %vm39_vm8, %v123_v24, %v99_v1 }
  0xaf   :  { %v126_v29 = vsel %vm38_vm9, 0, %v124_v27 }
  0xb0   :  { %v103_v5 = vsub.s32 0, %v101_v3  ;;  %v233_v30 = vadd.s32 3, %v126_v29  ;;  %v130_v31 = vand.u32 3, %v126_v29 }
  0xb2   :  { %v294_v6 = vmin.u32 %v103_v5, %v101_v3  ;;  %v234_v32 = vand.u32 3, %v233_v30  ;;  %vm135_vm10 = vcmp.eq.s32.totalorder %v130_v31, 2  ;;  %vm132_vm12 = vcmp.eq.s32.totalorder %v130_v31, 0 }
  0xb3   :  { %vm131_vm14 = vcmp.lt.s32.totalorder %v130_v31, 2 }
  0xb4   :  { %v105_v7 = vclz %v294_v6  ;;  %vm239_vm11 = vcmp.eq.s32.totalorder %v234_v32, 2  ;;  %vm236_vm13 = vcmp.eq.s32.totalorder %v234_v32, 0  ;;  %vm235_vm15 = vcmp.lt.s32.totalorder %v234_v32, 2 }
  0xb6   :  { %v295_v8 = vadd.s32 4294967294, %v105_v7 }
  0xb8   :  { %vm296_vm7 = vcmp.lt.s32.totalorder %v295_v8, 0 }
  0xb9   :  { %v108_v10 = vsel %vm296_vm7, 0, %v295_v8 }
  0xba   :  { %v109_v12 = vsub.s32 32, %v108_v10  ;;  %v113_v13 = vsub.s32 4294967266, %v108_v10  ;;  %v110_v15 = vshll.u32 %v101_v3, %v108_v10 }
  0xbc   :  { %v111_v16 = vshrl.u32 %v93_v11, %v109_v12  ;;  %v114_v17 = vadd.s32 127, %v113_v13 }
  0xbe   :  { %v112_v18 = vor.u32 %v111_v16, %v110_v15  ;;  %v115_v19 = vshll.u32 %v114_v17, 23 }
  0xc0   :  { %v116_v20 = vor.u32 4788187, %v115_v19  ;;  %v119_v22 = vcvt.s32.f32 %v112_v18 }
  0xc2   :  { %v117_v21 = vand.u32 2147483647, %v116_v20 }
  0xc4   :  { %v120_v23 = vmul.f32 %v119_v22, %v117_v21 }
  0xc6   :  { %v121_v25 = vxor.u32 2147483648, %v120_v23 }
  0xc8   :  { %v122_v26 = vsel %vm39_vm8, %v121_v25, %v120_v23 }
  0xc9   :  { %v125_v28 = vsel %vm38_vm9, %v429_v9, %v122_v26 }
  0xca   :  { %334 = vcosq.f32 %v125_v28 }
  0xcb   :  { %336 = vsinq.f32 %v125_v28 }
  0xd4   :  { %v335_v33 = vpop.eup %334 }
  0xd5   :  { %v337_v34 = vpop.eup %336  ;;  %v136_v35 = vxor.u32 2147483648, %v335_v33 }
  0xd6   :  { %v133_v36 = vxor.u32 2147483648, %v337_v34 }
  0xd7   :  { %v137_v37 = vsel %vm135_vm10, %v136_v35, %v337_v34  ;;  %v241_v38 = vsel %vm239_vm11, %v136_v35, %v337_v34 }
  0xd8   :  { %v134_v14 = vsel %vm132_vm12, %v335_v33, %v133_v36  ;;  %v238_v39 = vsel %vm236_vm13, %v335_v33, %v133_v36 }
  0xd9   :  { %v138_v40 = vsel %vm131_vm14, %v134_v14, %v137_v37  ;;  %v242_v41 = vsel %vm235_vm15, %v238_v39, %v241_v38 }
  0xda   :  { %v139_v42 = vsel %vm129_vm1, nan, %v138_v40  ;;  %v243_v43 = vsel %vm129_vm1, nan, %v242_v41 }
  0xdb   :  { %v329_v44 = vpack.i.bf16 %v243_v43, %v139_v42 }
  0xdd   :  { %330 = vrot.lane.b32.xlu1 %v329_v44, %s394_s0 }
 0x14f   :  { %v331_v45 = vpop.permute.xlu1 %330 }
 0x150   :  { %v333_v46 = vunpack.i.h.bf16 %v331_v45  ;;  %v332_v47 = vunpack.i.l.bf16 %v331_v45 }
 0x152   :  { %v250_v48 = vsel %vm19_vm0, %v243_v43, %v333_v46  ;;  %v251_v9 = vsel %vm19_vm0, %v333_v46, %v243_v43  ;;  %v248_v49 = vsel %vm19_vm0, %v139_v42, %v332_v47  ;;  %v249_v50 = vsel %vm19_vm0, %v332_v47, %v139_v42 }
 0x153   :  { %v309_v51 = vpack.c.bf16 %v251_v9, %v250_v48  ;;  %v304_v52 = vpack.c.bf16 %v249_v50, %v248_v49 }
 0x155   :  { %310 = vst [vmem:[#allocation4] sm:$0xff] %v309_v51   ;;  %305 = vst [vmem:[#allocation2] sm:$0xff] %v304_v52  }
 0x156   :  { %349 = shalt.err (!%p346_p4)
}
 0x157   :  { %s350_s22 = scalar_lea.hbm %s496_s2, 128 }
 0x158   :  { %p351_p5 = scmp.ne.s32.totalorder %s496_s2, %s350_s22  ;;  %p354_p6 = scmp.lt.u32.totalorder %s350_s22, %s496_s2 }
 0x15a   :  { %p356_p7 = pnand %p354_p6, %p351_p5 }
 0x15c   :  { %359 = shalt.err (!%p356_p7)
}
 0x15d   :  { %s397_s27 = smov 4   ;;  %s360_s30 = scalar_lea.vmem %s459_s18, 128 }
 0x15e   :  { %271 = dma.vmem_to_hbm [thread:$0]  %s266_s16, 128, %s496_s2, [#allocation3], %s394_s0, %s394_s0, %s397_s27  }
 0x15f   :  { %p361_p8 = scmp.ne.s32.totalorder %s459_s18, %s360_s30  ;;  %p365_p9 = scmp.lt.s32.totalorder %s459_s18, %s459_s18 }
 0x160   :  { %p366_p10 = scmp.lt.s32.totalorder %s360_s30, %s360_s30 }
 0x162   :  { %p367_p11 = por %p366_p10, %p365_p9 }
 0x164   :  { %p368_p12 = pnand %p367_p11, %p361_p8 }
 0x166   :  { %371 = shalt.err (!%p368_p12)
}
 0x167   :  { %s372_s6 = scalar_lea.hbm %s497_s3, 128 }
 0x168   :  { %p373_p13 = scmp.ne.s32.totalorder %s497_s3, %s372_s6  ;;  %p376_p0 = scmp.lt.u32.totalorder %s372_s6, %s497_s3 }
 0x16a   :  { %p378_p1 = pnand %p376_p0, %p373_p13 }
 0x16c   :  { %381 = shalt.err (!%p378_p1)
}
 0x16d   :  { %283 = dma.vmem_to_hbm [thread:$0]  %s459_s18, 128, %s497_s3, [#allocation5], %s394_s0, %s394_s0, %s397_s27  }
 0x16e   :  { %382 = dma.done.wait [#allocation3], 128  }
 0x16f   :  { %383 = vsyncadd [#allocation3], 4294967168 }
 0x170   :  { %384 = dma.done.wait [#allocation5], 128  }
 0x171   :  { %385 = vsyncadd [#allocation5], 4294967168 }
 0x172   :  { %290 = vsyncpa [#allocation3], 1 }
 0x173   :  { %291 = vsyncpa [#allocation5], 1 }

</bundles_post_ra>
